<compile_context>
chip_gen: v6e
topology: v6e:2x2x1
jax: 0.10.0
libtpu: 0.0.40
codegen_flags: <defaults>
</compile_context>

<pallas_src>
import jax
import jax.numpy as jnp
from jax import lax
from jax.experimental import pallas as pl
from jax.experimental.pallas import tpu as pltpu

# ---- module-consistent hyper-params (small shapes for the self-test) ----------
VOCAB_SIZE = 1024        # module default is 95811; table stays in HBM so this scales
EMBED_DIM = 64
NUM_CLASSES = 4
LANE = 128               # classifier padded to full lane width
NUM_BAGS = 8             # batch of bags (len(offsets))
NUM_TOKENS = 64          # total flattened tokens (len(text))


# ---------------- Pallas kernel ------------------------------------------------
def _embedding_bag_fc_kernel(
    # scalar-prefetch (SMEM) refs
    text_s,      # (T,) int32 token ids
    starts_s,    # (B,) int32 bag start offsets
    ends_s,      # (B,) int32 bag end offsets (last == T)
    # inputs
    emb_hbm,     # (V, E) f32 embedding table, left in HBM (memory_space=ANY)
    fcw_ref,     # (E, 128) f32 fc weight^T, zero-padded to lane width
    fcb_ref,     # (1, 128) f32 fc bias, zero-padded
    # outputs
    o_ref,       # (B, 128) f32 padded logits
    # scratch
    gathered,    # (T, E) f32 VMEM scratch for the gathered rows
    sems,        # (T,) DMA semaphores
):
    T, E = gathered.shape
    B = o_ref.shape[0]
    V = emb_hbm.shape[0]

    # ---- 1) EmbeddingBag row gather: DMA only the T referenced rows ----------
    @pl.loop(0, T)
    def _start(t):
        tok = text_s[t]
        tok = jnp.minimum(jnp.maximum(tok, 0), V - 1)   # guard HBM OOB DMA
        pltpu.make_async_copy(
            emb_hbm.at[pl.ds(tok, 1), :], gathered.at[pl.ds(t, 1), :], sems.at[t]
        ).start()

    @pl.loop(0, T)
    def _wait(t):
        pltpu.make_async_copy(
            emb_hbm.at[pl.ds(0, 1), :], gathered.at[pl.ds(t, 1), :], sems.at[t]
        ).wait()

    # ---- 2) ragged per-bag mean as a normalized segment-mask matmul ----------
    t_iota = lax.broadcasted_iota(jnp.int32, (1, T), 1)
    rows = []
    for b in range(B):                       # B is small & static -> unrolled
        s = starts_s[b]
        e = ends_s[b]
        m = jnp.logical_and(t_iota >= s, t_iota < e).astype(jnp.float32)
        inv = 1.0 / jnp.maximum(e - s, 1).astype(jnp.float32)   # empty bag -> 0 row
        rows.append(m * inv)
    seg = jnp.concatenate(rows, axis=0)                          # (B, T)

    pooled = jnp.dot(seg, gathered[...],
                     preferred_element_type=jnp.float32)         # (B, E)

    # ---- 3) classifier (lane-dense, padded to 128 output lanes) --------------
    o_ref[...] = jnp.dot(pooled, fcw_ref[...],
                         preferred_element_type=jnp.float32) + fcb_ref[...]


# ---------------- pallas_call wrapper ------------------------------------------
def text_classification_forward(text, offsets, params):
    """text: (T,) int32, offsets: (B,) int32 -> (B, num_class) f32 logits."""
    T = text.shape[0]
    B = offsets.shape[0]
    V, E = params["embedding"].shape
    Cp = params["fc_w_t_pad"].shape[-1]     # padded lane width (128)

    ends = jnp.concatenate([offsets[1:], jnp.array([T], dtype=jnp.int32)])

    grid_spec = pltpu.PrefetchScalarGridSpec(
        num_scalar_prefetch=3,               # text, starts, ends -> SMEM
        grid=(1,),
        in_specs=[
            pl.BlockSpec(memory_space=pl.ANY),                  # embedding table (HBM)
            pl.BlockSpec((E, Cp), lambda i, *_: (0, 0)),        # fc weight^T (padded)
            pl.BlockSpec((1, Cp), lambda i, *_: (0, 0)),        # fc bias (padded)
        ],
        out_specs=pl.BlockSpec((B, Cp), lambda i, *_: (0, 0)),
        scratch_shapes=[
            pltpu.VMEM((T, E), jnp.float32),                    # gathered rows
            pltpu.SemaphoreType.DMA((T,)),                      # one sem per row DMA
        ],
    )

    out_padded = pl.pallas_call(
        _embedding_bag_fc_kernel,
        out_shape=jax.ShapeDtypeStruct((B, Cp), jnp.float32),
        grid_spec=grid_spec,
        compiler_params=pltpu.CompilerParams(
            dimension_semantics=("arbitrary",),
            vmem_limit_bytes=32 * 1024 * 1024,   # v5e default scoped limit is 16 MiB
        ),
    )(text.astype(jnp.int32), offsets.astype(jnp.int32), ends.astype(jnp.int32),
      params["embedding"], params["fc_w_t_pad"], params["fc_b_pad"])

    return out_padded[:, :NUM_CLASSES]


# ---------------- parameter init (matches init_weights) ------------------------
def init_params(key):
    k_emb, k_fc = jax.random.split(key)
    initrange = 0.5
    embedding = jax.random.uniform(k_emb, (VOCAB_SIZE, EMBED_DIM), jnp.float32,
                                   minval=-initrange, maxval=initrange)
    fc_w = jax.random.uniform(k_fc, (NUM_CLASSES, EMBED_DIM), jnp.float32,
                              minval=-initrange, maxval=initrange)
    fc_w_t = jnp.transpose(fc_w)                                  # (E, C)
    fc_w_t_pad = jnp.zeros((EMBED_DIM, LANE), jnp.float32).at[:, :NUM_CLASSES].set(fc_w_t)
    fc_b_pad = jnp.zeros((1, LANE), jnp.float32)                  # bias zero-init
    return {
        "embedding": embedding,       # (V, E)
        "fc_w_t": fc_w_t,             # (E, C)   (reference path)
        "fc_w_t_pad": fc_w_t_pad,     # (E, 128) lane-padded
        "fc_b_pad": fc_b_pad,         # (1, 128) lane-padded
    }


# ---------------- pure-JAX reference (EmbeddingBag 'mean' + Linear) ------------
def reference_forward(text, offsets, params):
    T = text.shape[0]
    emb = params["embedding"][text]                                    # (T, E)
    ends = jnp.concatenate([offsets[1:], jnp.array([T], dtype=jnp.int32)])
    t_idx = jnp.arange(T, dtype=jnp.int32)
    mask = (t_idx[None, :] >= offsets[:, None]) & (t_idx[None, :] < ends[:, None])
    counts = jnp.maximum(ends - offsets, 1).astype(jnp.float32)
    pooled = (mask.astype(jnp.float32) @ emb) / counts[:, None]        # (B, E)
    return pooled @ params["fc_w_t"]                                   # (B, C), bias = 0


# ---------------- main ----------------------------------------------------------
if __name__ == "__main__":
    key = jax.random.PRNGKey(0)
    pkey, tkey = jax.random.split(key)
    params = init_params(pkey)

    # Deterministic ragged bags: 8 bags with these lengths (sum == NUM_TOKENS).
    lengths = [5, 9, 7, 12, 3, 10, 8, 10]
    assert sum(lengths) == NUM_TOKENS and len(lengths) == NUM_BAGS
    offs = [0]
    for L in lengths[:-1]:
        offs.append(offs[-1] + L)
    offsets = jnp.array(offs, dtype=jnp.int32)                          # (B,)
    text = jax.random.randint(tkey, (NUM_TOKENS,), 0, VOCAB_SIZE,
                              dtype=jnp.int32)                          # (T,)

    out = jax.block_until_ready(text_classification_forward(text, offsets, params))
    ref = jax.block_until_ready(reference_forward(text, offsets, params))

    assert out.shape == (NUM_BAGS, NUM_CLASSES), out.shape
    assert bool(jnp.all(jnp.isfinite(out)))
    max_err = float(jnp.max(jnp.abs(out - ref)))
    assert max_err < 5e-3, f"max abs diff vs reference too large: {max_err}"

    print("KERNEL_OK")
</pallas_src>

<mosaic_0001>
module attributes {stable_mosaic.version = 11 : i64} {
  func.func @_embedding_bag_fc_kernel(%arg0: i32, %arg1: memref<64xi32, #tpu.memory_space<smem>>, %arg2: memref<8xi32, #tpu.memory_space<smem>>, %arg3: memref<8xi32, #tpu.memory_space<smem>>, %arg4: memref<1024x64xf32, #tpu.memory_space<any>>, %arg5: memref<64x128xf32, #tpu.memory_space<vmem>>, %arg6: memref<1x128xf32, #tpu.memory_space<vmem>>, %arg7: memref<8x128xf32, #tpu.memory_space<vmem>>, %arg8: memref<64x64xf32, #tpu.memory_space<vmem>>, %arg9: memref<64x!tpu.dma_semaphore, #tpu.memory_space<semaphore_mem>>) attributes {dimension_semantics = [#tpu.dimension_semantics<arbitrary>], iteration_bounds = array<i64: 1>, scalar_prefetch = 3 : i64, scratch_operands = 2 : i64, tpu.core_type = #tpu.core_type<tc>, window_params = [{}, {pipeline_mode = #tpu.pipeline_mode<synchronous>, transform_indices = @transform_1, window_bounds = array<i64: 64, 128>}, {pipeline_mode = #tpu.pipeline_mode<synchronous>, transform_indices = @transform_2, window_bounds = array<i64: 1, 128>}, {pipeline_mode = #tpu.pipeline_mode<synchronous>, transform_indices = @transform_3, window_bounds = array<i64: 8, 128>}]} {
    %c0_i32 = arith.constant 0 : i32
    %c64_i32 = arith.constant 64 : i32
    %0 = arith.addi %c0_i32, %c64_i32 : i32
    %c1_i32 = arith.constant 1 : i32
    scf.for %arg10 = %c0_i32 to %0 step %c1_i32  : i32 {
      %c1_i32_38 = arith.constant 1 : i32
      %132 = arith.muli %arg10, %c1_i32_38 : i32
      %c0_i32_39 = arith.constant 0 : i32
      %133 = arith.addi %c0_i32_39, %132 : i32
      %134 = arith.index_cast %133 : i32 to index
      %135 = memref.load %arg1[%134] : memref<64xi32, #tpu.memory_space<smem>>
      %c0_i32_40 = arith.constant 0 : i32
      %136 = arith.maxsi %135, %c0_i32_40 : i32
      %c1023_i32 = arith.constant 1023 : i32
      %137 = arith.minsi %136, %c1023_i32 : i32
      %c0_i32_41 = arith.constant 0 : i32
      %138 = tpu.memref_slice %arg4[%137, %c0_i32_41] : memref<1024x64xf32, #tpu.memory_space<any>> -> memref<1x64xf32, #tpu.memory_space<any>>
      %c0_i32_42 = arith.constant 0 : i32
      %139 = tpu.memref_slice %arg8[%133, %c0_i32_42] : memref<64x64xf32, #tpu.memory_space<vmem>> -> memref<1x64xf32, #tpu.memory_space<vmem>>
      %140 = tpu.memref_slice %arg9[%133] : memref<64x!tpu.dma_semaphore, #tpu.memory_space<semaphore_mem>> -> memref<1x!tpu.dma_semaphore, #tpu.memory_space<semaphore_mem>>
      %141 = tpu.memref_squeeze %140 : memref<1x!tpu.dma_semaphore, #tpu.memory_space<semaphore_mem>> -> memref<!tpu.dma_semaphore, #tpu.memory_space<semaphore_mem>>
      tpu.enqueue_dma source(%138 : memref<1x64xf32, #tpu.memory_space<any>>) target(%139 : memref<1x64xf32, #tpu.memory_space<vmem>>) target_semaphore(%141 : memref<!tpu.dma_semaphore, #tpu.memory_space<semaphore_mem>>)
    }
    %c64_i32_0 = arith.constant 64 : i32
    %c0_i32_1 = arith.constant 0 : i32
    %c64_i32_2 = arith.constant 64 : i32
    %1 = arith.addi %c0_i32_1, %c64_i32_2 : i32
    %c1_i32_3 = arith.constant 1 : i32
    scf.for %arg10 = %c0_i32_1 to %1 step %c1_i32_3  : i32 {
      %c1_i32_38 = arith.constant 1 : i32
      %132 = arith.muli %arg10, %c1_i32_38 : i32
      %c0_i32_39 = arith.constant 0 : i32
      %133 = arith.addi %c0_i32_39, %132 : i32
      %c0_i32_40 = arith.constant 0 : i32
      %c0_i32_41 = arith.constant 0 : i32
      %134 = tpu.memref_slice %arg4[%c0_i32_40, %c0_i32_41] : memref<1024x64xf32, #tpu.memory_space<any>> -> memref<1x64xf32, #tpu.memory_space<any>>
      %c0_i32_42 = arith.constant 0 : i32
      %135 = tpu.memref_slice %arg8[%133, %c0_i32_42] : memref<64x64xf32, #tpu.memory_space<vmem>> -> memref<1x64xf32, #tpu.memory_space<vmem>>
      %136 = tpu.memref_slice %arg9[%133] : memref<64x!tpu.dma_semaphore, #tpu.memory_space<semaphore_mem>> -> memref<1x!tpu.dma_semaphore, #tpu.memory_space<semaphore_mem>>
      %137 = tpu.memref_squeeze %136 : memref<1x!tpu.dma_semaphore, #tpu.memory_space<semaphore_mem>> -> memref<!tpu.dma_semaphore, #tpu.memory_space<semaphore_mem>>
      tpu.wait_dma2 semaphore(%137 : memref<!tpu.dma_semaphore, #tpu.memory_space<semaphore_mem>>) src(%134 : memref<1x64xf32, #tpu.memory_space<any>>) dst(%135 : memref<1x64xf32, #tpu.memory_space<vmem>>)
    }
    %c64_i32_4 = arith.constant 64 : i32
    %2 = tpu.iota {dimensions = array<i32: 1>} : vector<1x64xi32>
    %c0 = arith.constant 0 : index
    %3 = memref.load %arg2[%c0] : memref<8xi32, #tpu.memory_space<smem>>
    %c0_5 = arith.constant 0 : index
    %4 = memref.load %arg3[%c0_5] : memref<8xi32, #tpu.memory_space<smem>>
    %5 = vector.broadcast %3 : i32 to vector<1x64xi32>
    %6 = arith.cmpi sge, %2, %5 : vector<1x64xi32>
    %7 = vector.broadcast %4 : i32 to vector<1x64xi32>
    %8 = arith.cmpi slt, %2, %7 : vector<1x64xi32>
    %9 = arith.andi %6, %8 : vector<1x64xi1>
    %10 = arith.extui %9 : vector<1x64xi1> to vector<1x64xi32>
    %11 = arith.sitofp %10 : vector<1x64xi32> to vector<1x64xf32>
    %12 = arith.subi %4, %3 : i32
    %c1_i32_6 = arith.constant 1 : i32
    %13 = arith.maxsi %12, %c1_i32_6 : i32
    %14 = arith.sitofp %13 : i32 to f32
    %cst = arith.constant 1.000000e+00 : f32
    %15 = arith.divf %cst, %14 : f32
    %16 = vector.broadcast %15 : f32 to vector<1x64xf32>
    %17 = arith.mulf %11, %16 : vector<1x64xf32>
    %c1 = arith.constant 1 : index
    %18 = memref.load %arg2[%c1] : memref<8xi32, #tpu.memory_space<smem>>
    %c1_7 = arith.constant 1 : index
    %19 = memref.load %arg3[%c1_7] : memref<8xi32, #tpu.memory_space<smem>>
    %20 = vector.broadcast %18 : i32 to vector<1x64xi32>
    %21 = arith.cmpi sge, %2, %20 : vector<1x64xi32>
    %22 = vector.broadcast %19 : i32 to vector<1x64xi32>
    %23 = arith.cmpi slt, %2, %22 : vector<1x64xi32>
    %24 = arith.andi %21, %23 : vector<1x64xi1>
    %25 = arith.extui %24 : vector<1x64xi1> to vector<1x64xi32>
    %26 = arith.sitofp %25 : vector<1x64xi32> to vector<1x64xf32>
    %27 = arith.subi %19, %18 : i32
    %c1_i32_8 = arith.constant 1 : i32
    %28 = arith.maxsi %27, %c1_i32_8 : i32
    %29 = arith.sitofp %28 : i32 to f32
    %cst_9 = arith.constant 1.000000e+00 : f32
    %30 = arith.divf %cst_9, %29 : f32
    %31 = vector.broadcast %30 : f32 to vector<1x64xf32>
    %32 = arith.mulf %26, %31 : vector<1x64xf32>
    %c2 = arith.constant 2 : index
    %33 = memref.load %arg2[%c2] : memref<8xi32, #tpu.memory_space<smem>>
    %c2_10 = arith.constant 2 : index
    %34 = memref.load %arg3[%c2_10] : memref<8xi32, #tpu.memory_space<smem>>
    %35 = vector.broadcast %33 : i32 to vector<1x64xi32>
    %36 = arith.cmpi sge, %2, %35 : vector<1x64xi32>
    %37 = vector.broadcast %34 : i32 to vector<1x64xi32>
    %38 = arith.cmpi slt, %2, %37 : vector<1x64xi32>
    %39 = arith.andi %36, %38 : vector<1x64xi1>
    %40 = arith.extui %39 : vector<1x64xi1> to vector<1x64xi32>
    %41 = arith.sitofp %40 : vector<1x64xi32> to vector<1x64xf32>
    %42 = arith.subi %34, %33 : i32
    %c1_i32_11 = arith.constant 1 : i32
    %43 = arith.maxsi %42, %c1_i32_11 : i32
    %44 = arith.sitofp %43 : i32 to f32
    %cst_12 = arith.constant 1.000000e+00 : f32
    %45 = arith.divf %cst_12, %44 : f32
    %46 = vector.broadcast %45 : f32 to vector<1x64xf32>
    %47 = arith.mulf %41, %46 : vector<1x64xf32>
    %c3 = arith.constant 3 : index
    %48 = memref.load %arg2[%c3] : memref<8xi32, #tpu.memory_space<smem>>
    %c3_13 = arith.constant 3 : index
    %49 = memref.load %arg3[%c3_13] : memref<8xi32, #tpu.memory_space<smem>>
    %50 = vector.broadcast %48 : i32 to vector<1x64xi32>
    %51 = arith.cmpi sge, %2, %50 : vector<1x64xi32>
    %52 = vector.broadcast %49 : i32 to vector<1x64xi32>
    %53 = arith.cmpi slt, %2, %52 : vector<1x64xi32>
    %54 = arith.andi %51, %53 : vector<1x64xi1>
    %55 = arith.extui %54 : vector<1x64xi1> to vector<1x64xi32>
    %56 = arith.sitofp %55 : vector<1x64xi32> to vector<1x64xf32>
    %57 = arith.subi %49, %48 : i32
    %c1_i32_14 = arith.constant 1 : i32
    %58 = arith.maxsi %57, %c1_i32_14 : i32
    %59 = arith.sitofp %58 : i32 to f32
    %cst_15 = arith.constant 1.000000e+00 : f32
    %60 = arith.divf %cst_15, %59 : f32
    %61 = vector.broadcast %60 : f32 to vector<1x64xf32>
    %62 = arith.mulf %56, %61 : vector<1x64xf32>
    %c4 = arith.constant 4 : index
    %63 = memref.load %arg2[%c4] : memref<8xi32, #tpu.memory_space<smem>>
    %c4_16 = arith.constant 4 : index
    %64 = memref.load %arg3[%c4_16] : memref<8xi32, #tpu.memory_space<smem>>
    %65 = vector.broadcast %63 : i32 to vector<1x64xi32>
    %66 = arith.cmpi sge, %2, %65 : vector<1x64xi32>
    %67 = vector.broadcast %64 : i32 to vector<1x64xi32>
    %68 = arith.cmpi slt, %2, %67 : vector<1x64xi32>
    %69 = arith.andi %66, %68 : vector<1x64xi1>
    %70 = arith.extui %69 : vector<1x64xi1> to vector<1x64xi32>
    %71 = arith.sitofp %70 : vector<1x64xi32> to vector<1x64xf32>
    %72 = arith.subi %64, %63 : i32
    %c1_i32_17 = arith.constant 1 : i32
    %73 = arith.maxsi %72, %c1_i32_17 : i32
    %74 = arith.sitofp %73 : i32 to f32
    %cst_18 = arith.constant 1.000000e+00 : f32
    %75 = arith.divf %cst_18, %74 : f32
    %76 = vector.broadcast %75 : f32 to vector<1x64xf32>
    %77 = arith.mulf %71, %76 : vector<1x64xf32>
    %c5 = arith.constant 5 : index
    %78 = memref.load %arg2[%c5] : memref<8xi32, #tpu.memory_space<smem>>
    %c5_19 = arith.constant 5 : index
    %79 = memref.load %arg3[%c5_19] : memref<8xi32, #tpu.memory_space<smem>>
    %80 = vector.broadcast %78 : i32 to vector<1x64xi32>
    %81 = arith.cmpi sge, %2, %80 : vector<1x64xi32>
    %82 = vector.broadcast %79 : i32 to vector<1x64xi32>
    %83 = arith.cmpi slt, %2, %82 : vector<1x64xi32>
    %84 = arith.andi %81, %83 : vector<1x64xi1>
    %85 = arith.extui %84 : vector<1x64xi1> to vector<1x64xi32>
    %86 = arith.sitofp %85 : vector<1x64xi32> to vector<1x64xf32>
    %87 = arith.subi %79, %78 : i32
    %c1_i32_20 = arith.constant 1 : i32
    %88 = arith.maxsi %87, %c1_i32_20 : i32
    %89 = arith.sitofp %88 : i32 to f32
    %cst_21 = arith.constant 1.000000e+00 : f32
    %90 = arith.divf %cst_21, %89 : f32
    %91 = vector.broadcast %90 : f32 to vector<1x64xf32>
    %92 = arith.mulf %86, %91 : vector<1x64xf32>
    %c6 = arith.constant 6 : index
    %93 = memref.load %arg2[%c6] : memref<8xi32, #tpu.memory_space<smem>>
    %c6_22 = arith.constant 6 : index
    %94 = memref.load %arg3[%c6_22] : memref<8xi32, #tpu.memory_space<smem>>
    %95 = vector.broadcast %93 : i32 to vector<1x64xi32>
    %96 = arith.cmpi sge, %2, %95 : vector<1x64xi32>
    %97 = vector.broadcast %94 : i32 to vector<1x64xi32>
    %98 = arith.cmpi slt, %2, %97 : vector<1x64xi32>
    %99 = arith.andi %96, %98 : vector<1x64xi1>
    %100 = arith.extui %99 : vector<1x64xi1> to vector<1x64xi32>
    %101 = arith.sitofp %100 : vector<1x64xi32> to vector<1x64xf32>
    %102 = arith.subi %94, %93 : i32
    %c1_i32_23 = arith.constant 1 : i32
    %103 = arith.maxsi %102, %c1_i32_23 : i32
    %104 = arith.sitofp %103 : i32 to f32
    %cst_24 = arith.constant 1.000000e+00 : f32
    %105 = arith.divf %cst_24, %104 : f32
    %106 = vector.broadcast %105 : f32 to vector<1x64xf32>
    %107 = arith.mulf %101, %106 : vector<1x64xf32>
    %c7 = arith.constant 7 : index
    %108 = memref.load %arg2[%c7] : memref<8xi32, #tpu.memory_space<smem>>
    %c7_25 = arith.constant 7 : index
    %109 = memref.load %arg3[%c7_25] : memref<8xi32, #tpu.memory_space<smem>>
    %110 = vector.broadcast %108 : i32 to vector<1x64xi32>
    %111 = arith.cmpi sge, %2, %110 : vector<1x64xi32>
    %112 = vector.broadcast %109 : i32 to vector<1x64xi32>
    %113 = arith.cmpi slt, %2, %112 : vector<1x64xi32>
    %114 = arith.andi %111, %113 : vector<1x64xi1>
    %115 = arith.extui %114 : vector<1x64xi1> to vector<1x64xi32>
    %116 = arith.sitofp %115 : vector<1x64xi32> to vector<1x64xf32>
    %117 = arith.subi %109, %108 : i32
    %c1_i32_26 = arith.constant 1 : i32
    %118 = arith.maxsi %117, %c1_i32_26 : i32
    %119 = arith.sitofp %118 : i32 to f32
    %cst_27 = arith.constant 1.000000e+00 : f32
    %120 = arith.divf %cst_27, %119 : f32
    %121 = vector.broadcast %120 : f32 to vector<1x64xf32>
    %122 = arith.mulf %116, %121 : vector<1x64xf32>
    %123 = tpu.concatenate %17, %32, %47, %62, %77, %92, %107, %122 in 0 : vector<1x64xf32>, vector<1x64xf32>, vector<1x64xf32>, vector<1x64xf32>, vector<1x64xf32>, vector<1x64xf32>, vector<1x64xf32>, vector<1x64xf32> -> vector<8x64xf32>
    %c0_28 = arith.constant 0 : index
    %c0_29 = arith.constant 0 : index
    %124 = vector.load %arg8[%c0_28, %c0_29] : memref<64x64xf32, #tpu.memory_space<vmem>>, vector<64x64xf32>
    %cst_30 = arith.constant dense<0.000000e+00> : vector<8x64xf32>
    %125 = tpu.matmul %123, %124, %cst_30 {dimension_numbers = #tpu.dot_dimension_numbers<[1], [0], [0], [1], [0, 0, 1, 1], [], []>} : vector<8x64xf32>, vector<64x64xf32>, vector<8x64xf32> -> vector<8x64xf32>
    %c0_31 = arith.constant 0 : index
    %c0_32 = arith.constant 0 : index
    %126 = vector.load %arg5[%c0_31, %c0_32] : memref<64x128xf32, #tpu.memory_space<vmem>>, vector<64x128xf32>
    %cst_33 = arith.constant dense<0.000000e+00> : vector<8x128xf32>
    %127 = tpu.matmul %125, %126, %cst_33 {dimension_numbers = #tpu.dot_dimension_numbers<[1], [0], [0], [1], [0, 0, 1, 1], [], []>} : vector<8x64xf32>, vector<64x128xf32>, vector<8x128xf32> -> vector<8x128xf32>
    %c0_34 = arith.constant 0 : index
    %c0_35 = arith.constant 0 : index
    %128 = vector.load %arg6[%c0_34, %c0_35] : memref<1x128xf32, #tpu.memory_space<vmem>>, vector<1x128xf32>
    %129 = vector.broadcast %128 : vector<1x128xf32> to vector<8x128xf32>
    %130 = arith.addf %127, %129 : vector<8x128xf32>
    %c0_36 = arith.constant 0 : index
    %c0_37 = arith.constant 0 : index
    %131 = vector.load %arg7[%c0_36, %c0_37] : memref<8x128xf32, #tpu.memory_space<vmem>>, vector<8x128xf32>
    tpu.vector_store %arg7[%c0_36, %c0_37], %130 {strides = array<i32>} : memref<8x128xf32, #tpu.memory_space<vmem>>, vector<8x128xf32>,
    return
  }
  func.func @transform_1(%arg0: i32, %arg1: memref<64xi32, #tpu.memory_space<smem>>, %arg2: memref<8xi32, #tpu.memory_space<smem>>, %arg3: memref<8xi32, #tpu.memory_space<smem>>) -> (i32, i32) {
    %c0_i32 = arith.constant 0 : i32
    %c0_i32_0 = arith.constant 0 : i32
    %c0_i32_1 = arith.constant 0 : i32
    return %c0_i32, %c0_i32_0 : i32, i32
  }
  func.func @transform_2(%arg0: i32, %arg1: memref<64xi32, #tpu.memory_space<smem>>, %arg2: memref<8xi32, #tpu.memory_space<smem>>, %arg3: memref<8xi32, #tpu.memory_space<smem>>) -> (i32, i32) {
    %c0_i32 = arith.constant 0 : i32
    %c0_i32_0 = arith.constant 0 : i32
    %c0_i32_1 = arith.constant 0 : i32
    return %c0_i32, %c0_i32_0 : i32, i32
  }
  func.func @transform_3(%arg0: i32, %arg1: memref<64xi32, #tpu.memory_space<smem>>, %arg2: memref<8xi32, #tpu.memory_space<smem>>, %arg3: memref<8xi32, #tpu.memory_space<smem>>) -> (i32, i32) {
    %c0_i32 = arith.constant 0 : i32
    %c0_i32_0 = arith.constant 0 : i32
    %c0_i32_1 = arith.constant 0 : i32
    return %c0_i32, %c0_i32_0 : i32, i32
  }
}

</mosaic_0001>

<bundles_post_ra>
// kernel: tpu_custom_call.1
= control target key start
LH: loop header
LB: loop body
LE: loop exit
PB: predicated region body
PF: predicated region fallthrough
CT: control target
= control target key end

     0   :  { %s1449_s0 = inlined_call_operand.vmem [shape: s32[64], index: 0, kind: input, shape index: {}]   ;;  %s1450_s3 = inlined_call_operand.vmem [shape: f32[1024,64], index: 3, kind: input, shape index: {}]   ;;  %s1451_s4 = inlined_call_operand.vmem [shape: f32[64,128], index: 4, kind: input, shape index: {}]   ;;  %s1452_s5 = inlined_call_operand.vmem [shape: f32[1,128], index: 5, kind: input, shape index: {}]   ;;  %s1453_s6 = inlined_call_operand.hbm [shape: f32[8,128], index: 6, kind: output, shape index: {}]   ;;  %s1454_s1 = inlined_call_operand.vmem [shape: s32[8], index: 1, kind: input, shape index: {}]   ;;  %s1455_s2 = inlined_call_operand.vmem [shape: s32[8], index: 2, kind: input, shape index: {}]  }
   0x1   :  { %s11_s23 = sshll.u32 %s1449_s0, 4  ;;  %s15_s26 = sshll.u32 %s1454_s1, 4  ;;  %s12_s23 = int_to_ptr.vmem [resolvable:$true] %s11_s23  ;;  %s16_s26 = int_to_ptr.vmem [resolvable:$true] %s15_s26 }
   0x2   :  { %s1122_s27 = scalar_lea.vmem %s12_s23, 16  ;;  %p1127_p1 = scmp.lt.s32.totalorder %s12_s23, %s12_s23 }
   0x3   :  { %p1123_p0 = scmp.ne.s32.totalorder %s12_s23, %s1122_s27  ;;  %p1128_p2 = scmp.lt.s32.totalorder %s1122_s27, %s1122_s27 }
   0x5   :  { %p1129_p3 = por %p1128_p2, %p1127_p1 }
   0x7   :  { %p1130_p4 = pnand %p1129_p3, %p1123_p0 }
   0x9   :  { %1133 = shalt.err (!%p1130_p4)  }
   0xa   :  { %s1200_s28 = smov [#allocation5]   ;;  %s1134_s29 = scalar_lea.vmem %s16_s26, 16 }
   0xb   :  { %14 = dma.vmem_to_smem %s12_s23, 16, %s1200_s28, [#allocation4] }
   0xc   :  { %p1135_p5 = scmp.ne.s32.totalorder %s16_s26, %s1134_s29  ;;  %p1139_p6 = scmp.lt.s32.totalorder %s16_s26, %s16_s26 }
   0xd   :  { %p1140_p7 = scmp.lt.s32.totalorder %s1134_s29, %s1134_s29 }
   0xf   :  { %p1141_p8 = por %p1140_p7, %p1139_p6 }
  0x11   :  { %p1142_p9 = pnand %p1141_p8, %p1135_p5 }
  0x13   :  { %1145 = shalt.err (!%p1142_p9)  }
  0x14   :  { %s1201_s0 = smov [#allocation6]   ;;  %s19_s7 = sshll.u32 %s1455_s2, 4  ;;  %s20_s7 = int_to_ptr.vmem [resolvable:$true] %s19_s7 }
  0x15   :  { %18 = dma.vmem_to_smem %s16_s26, 16, %s1201_s0, [#allocation4] }
  0x16   :  { %s1146_s8 = scalar_lea.vmem %s20_s7, 16  ;;  %p1151_p11 = scmp.lt.s32.totalorder %s20_s7, %s20_s7 }
  0x17   :  { %p1147_p10 = scmp.ne.s32.totalorder %s20_s7, %s1146_s8  ;;  %p1152_p12 = scmp.lt.s32.totalorder %s1146_s8, %s1146_s8 }
  0x19   :  { %p1153_p13 = por %p1152_p12, %p1151_p11 }
  0x1b   :  { %p1154_p0 = pnand %p1153_p13, %p1147_p10 }
  0x1d   :  { %1157 = shalt.err (!%p1154_p0)  }
  0x1e   :  { %s1202_s9 = smov [#allocation7]  }
  0x1f   :  { %22 = dma.vmem_to_smem %s20_s7, 16, %s1202_s9, [#allocation4] }
  0x20   :  { %1186 = dma.done.wait [#allocation4], 48 }
  0x21   :  { %1187 = vsyncadd [#allocation4], 4294967248 }
  0x22   :  { %24 = sfence }
  0x23   :  { %25 = vsyncpa [#allocation9], 0  ;;  %s1192_s10 = smov 0  }
  0x24 LB: > { %s36_s11 = sld [smem:[#allocation5 + %s1194_s10]]  ;;  %s42_s14 = scalar_lea.vmem [#allocation2], %s1194_s10  ;;  %s1194_s10 = sphi %s1192_s10, %s35_s10  }
  0x25   : > { %s43_s15 = scalar_lea.sflag [#allocation3], %s1194_s10 }
  0x2a   : > { %p37_p1 = scmp.gt.s32.totalorder %s36_s11, 0  ;;  %p916_p2 = scmp.lt.s32.totalorder %s36_s11, 1023 }
  0x2c   : > { %s1473_s11 = smov (!%p37_p1, %s36_s11), 0 }
  0x2d   : > { %s1475_s11 = smov (!%p916_p2, %s1473_s11), 1023 }
  0x2e   : > { %s41_s13 = scalar_lea.vmem %s1450_s3, %s1475_s11 }
  0x2f   : > { %v62_v0 = vld [vmem:[%s41_s13] sm:$0x1] }
  0x30   : > { %63 = vst [vmem:[%s42_s14] sm:$0x1] %v62_v0 }
  0x31   : > { %89 = vsyncadd %s43_s15, 16  ;;  %s35_s10 = sadd.s32 1, %s1194_s10  }
  0x32   : > { %p32_p3 = scmp.ge.s32.totalorder %s35_s10, 64  }
  0x33   :  { %s1196_s16 = smov (%p32_p3), 0  }
  0x34   :  { %34 = sbr.rel (!%p32_p3) target bundleno = 36 (0x24), region = 149 }
  0x39 LB: > { %s96_s17 = scalar_lea.sflag [#allocation3], %s1198_s16  ;;  %s1198_s16 = sphi %s1196_s16, %s95_s16  }
  0x3a   : > { %1188 = dma.done.wait %s96_s17, 16 }
  0x3b   : > { %1189 = vsyncadd %s96_s17, 4294967280  ;;  %s95_s16 = sadd.s32 1, %s1198_s16  }
  0x3c   : > { %p92_p4 = scmp.ge.s32.totalorder %s95_s16, 64  }
  0x3d   :  { %s1253_s18 = sld [smem:[#allocation6]] (%p92_p4)  ;;  %v267_v1 = vld [vmem:[#allocation2 + $0x38] sm:$0xff] (%p92_p4)  ;;  %v100_v2 = vlaneseq (%p92_p4)  ;;  %v1203_v3 = vmov (%p92_p4), 0.0   ;;  %v266_v4 = vld [vmem:[#allocation2 + $0x30] sm:$0xff] (%p92_p4)  ;;  %v265_v6 = vld [vmem:[#allocation2 + $0x28] sm:$0xff] (%p92_p4)  ;;  %vm1204_vm0 = vmmov (%p92_p4), 0  }
  0x3e   :  { %94 = sbr.rel (!%p92_p4) target bundleno = 57 (0x39), region = 160  ;;  %s1255_s19 = sld [smem:[#allocation7]] (%p92_p4)  ;;  %1030 = vmatprep.subr.mxu0 (%p92_p4), %v1203_v3  ;;  %1049 = vmatprep.subr.mxu1 (%p92_p4), %v1203_v3  ;;  %v349_v7 = vld [vmem:[%s1451_s4 + $0x38] sm:$0xff] (%p92_p4)  ;;  %v264_v8 = vld [vmem:[#allocation2 + $0x20] sm:$0xff] (%p92_p4)  ;;  %v348_v9 = vld [vmem:[%s1451_s4 + $0x30] sm:$0xff] (%p92_p4) }
  0x3f   :  { %s1259_s3 = sld [smem:[#allocation6 + $0x1]] (%p92_p4)  ;;  %1031 = vmatpush3.msra.mxu0 (%p92_p4), %v267_v1  ;;  %v1264_v5 = vand.u32 (%p92_p4), 127, %v100_v2  ;;  %1046 = vmatprep.mubr.msk.f32.mxu0 (%p92_p4), %vm1204_vm0, %v1203_v3  ;;  %v347_v11 = vld [vmem:[%s1451_s4 + $0x28] sm:$0xff] (%p92_p4)  ;;  %v263_v14 = vld [vmem:[#allocation2 + $0x18] sm:$0xff] (%p92_p4)  ;;  %v346_v16 = vld [vmem:[%s1451_s4 + $0x20] sm:$0xff] (%p92_p4) }
  0x40   :  { %s1261_s20 = sld [smem:[#allocation7 + $0x1]] (%p92_p4)  ;;  %1032 = vmatprep.subr.mxu0 (%p92_p4), %v1203_v3  ;;  %1050 = vmatpush3.msra.mxu1 (%p92_p4), %v349_v7  ;;  %v262_v19 = vld [vmem:[#allocation2 + $0x10] sm:$0xff] (%p92_p4)  ;;  %v345_v23 = vld [vmem:[%s1451_s4 + $0x18] sm:$0xff] (%p92_p4)  ;;  %v261_v26 = vld [vmem:[#allocation2 + $0x8] sm:$0xff] (%p92_p4) }
  0x41   :  { %s1266_s21 = sld [smem:[#allocation6 + $0x2]] (%p92_p4)  ;;  %1033 = vmatpush3.msra.mxu0 (%p92_p4), %v266_v4  ;;  %1051 = vmatprep.subr.mxu1 (%p92_p4), %v1203_v3  ;;  %v344_v29 = vld [vmem:[%s1451_s4 + $0x10] sm:$0xff] (%p92_p4)  ;;  %v260_v32 = vld [vmem:[#allocation2] sm:$0xff] (%p92_p4)  ;;  %v343_v37 = vld [vmem:[%s1451_s4 + $0x8] sm:$0xff] (%p92_p4) }
  0x42   :  { %s1273_s24 = sld [smem:[#allocation7 + $0x2]] (%p92_p4)  ;;  %1034 = vmatprep.subr.mxu0 (%p92_p4), %v1203_v3  ;;  %1052 = vmatpush3.msra.mxu1 (%p92_p4), %v348_v9 }
  0x43   :  { %s1279_s27 = sld [smem:[#allocation6 + $0x3]]  ;;  %v104_v10 = vstv %s1253_s18  ;;  %1035 = vmatpush3.msra.mxu0 %v265_v6  ;;  %1053 = vmatprep.subr.mxu1 %v1203_v3 }
  0x44   :  { %s111_s0 = ssub.s32 %s1255_s19, %s1253_s18  ;;  %s1288_s1 = sld [smem:[#allocation7 + $0x3]]  ;;  %vm1291_vm1 = vcmp.ge.s32.totalorder %v1264_v5, %v104_v10  ;;  %v106_v13 = vstv %s1255_s19  ;;  %1036 = vmatprep.subr.mxu0 %v1203_v3  ;;  %1054 = vmatpush3.msra.mxu1 %v347_v11 }
  0x45   :  { %p112_p5 = scmp.gt.s32.totalorder %s111_s0, 1  ;;  %s1297_s30 = sld [smem:[#allocation6 + $0x4]]  ;;  %vm107_vm2 = vcmp.lt.s32.totalorder %v1264_v5, %v106_v13  ;;  %v122_v15 = vstv %s1259_s3  ;;  %1037 = vmatpush3.msra.mxu0 %v264_v8  ;;  %1055 = vmatprep.subr.mxu1 %v1203_v3 }
  0x46   :  { %s1307_s9 = ssub.s32 %s1261_s20, %s1259_s3  ;;  %s1309_s10 = sld [smem:[#allocation7 + $0x4]]  ;;  %vm108_vm3 = vmand %vm1291_vm1, %vm107_vm2  ;;  %vm1314_vm4 = vcmp.ge.s32.totalorder %v1264_v5, %v122_v15  ;;  %v124_v18 = vstv %s1261_s20  ;;  %1038 = vmatprep.subr.mxu0 %v1203_v3  ;;  %1056 = vmatpush3.msra.mxu1 %v346_v16 }
  0x47   :  { %s1477_s0 = smov (!%p112_p5, %s111_s0), 1  ;;  %v1324_v20 = vsel %vm108_vm3, 1.0, %v1203_v3  ;;  %vm1327_vm5 = vcmp.lt.s32.totalorder %v1264_v5, %v124_v18  ;;  %v140_v22 = vstv %s1266_s21  ;;  %1039 = vmatpush3.msra.mxu0 %v263_v14  ;;  %p130_p6 = scmp.gt.s32.totalorder %s1307_s9, 1  ;;  %1057 = vmatprep.subr.mxu1 %v1203_v3 }
  0x48   :  { %s147_s12 = ssub.s32 %s1273_s24, %s1266_s21  ;;  %vm126_vm6 = vmand %vm1314_vm4, %vm1327_vm5  ;;  %vm1344_vm7 = vcmp.ge.s32.totalorder %v1264_v5, %v140_v22  ;;  %v142_v25 = vstv %s1273_s24  ;;  %1040 = vmatprep.subr.mxu0 %v1203_v3  ;;  %s114_s13 = scvt.s32.f32 %s1477_s0  ;;  %1058 = vmatpush3.msra.mxu1 %v345_v23 }
  0x49   :  { %p148_p7 = scmp.gt.s32.totalorder %s147_s12, 1  ;;  %v1352_v27 = vsel %vm126_vm6, 1.0, %v1203_v3  ;;  %vm143_vm8 = vcmp.lt.s32.totalorder %v1264_v5, %v142_v25  ;;  %v158_v28 = vstv %s1279_s27  ;;  %1041 = vmatpush3.msra.mxu0 %v262_v19  ;;  %s1479_s9 = smov (!%p130_p6, %s1307_s9), 1  ;;  %1059 = vmatprep.subr.mxu1 %v1203_v3 }
  0x4a   :  { %vm144_vm9 = vmand %vm1344_vm7, %vm143_vm8  ;;  %vm1368_vm10 = vcmp.ge.s32.totalorder %v1264_v5, %v158_v28  ;;  %v160_v31 = vstv %s1288_s1  ;;  %1042 = vmatprep.subr.mxu0 %v1203_v3  ;;  %v115_v33 = vstv %s114_s13  ;;  %s132_s18 = scvt.s32.f32 %s1479_s9  ;;  %s165_s19 = ssub.s32 %s1288_s1, %s1279_s27  ;;  %1060 = vmatpush3.msra.mxu1 %v344_v29  ;;  %v944_v29 = vld [vmem:[%s1452_s5] ss:$0 sm:$0xff] }
  0x4b   :  { %s1481_s12 = smov (!%p148_p7, %s147_s12), 1  ;;  %v1376_v34 = vsel %vm144_vm9, 1.0, %v1203_v3  ;;  %vm1379_vm11 = vcmp.lt.s32.totalorder %v1264_v5, %v160_v31  ;;  %v176_v36 = vstv %s1297_s30  ;;  %1043 = vmatpush3.msra.mxu0 %v261_v26  ;;  %1106 = vrcp.f32 %v115_v33  ;;  %p166_p8 = scmp.gt.s32.totalorder %s165_s19, 1  ;;  %1061 = vmatprep.subr.mxu1 %v1203_v3  ;;  %v342_v26 = vld [vmem:[%s1451_s4] sm:$0xff] }
  0x4c   :  { %vm162_vm12 = vmand %vm1368_vm10, %vm1379_vm11  ;;  %vm1396_vm13 = vcmp.ge.s32.totalorder %v1264_v5, %v176_v36  ;;  %v178_v39 = vstv %s1309_s10  ;;  %1044 = vmatprep.subr.mxu0 %v1203_v3  ;;  %s150_s3 = scvt.s32.f32 %s1481_s12  ;;  %v133_v41 = vstv %s132_s18  ;;  %s183_s20 = ssub.s32 %s1309_s10, %s1297_s30  ;;  %1062 = vmatpush3.msra.mxu1 %v343_v37  ;;  %vm246_vm9 = vcmask 1040384  }
  0x4d   :  { %v1403_v40 = vsel %vm162_vm12, 1.0, %v1203_v3  ;;  %vm179_vm14 = vcmp.lt.s32.totalorder %v1264_v5, %v178_v39  ;;  %1045 = vmatpush3.msra.mxu0 %v260_v32  ;;  %s934_s21 = sld [smem:[#allocation6 + $0x5]]  ;;  %1065 = vmatprep.mubr.msk.f32.mxu1 %vm1204_vm0, %v1203_v3  ;;  %1108 = vrcp.f32 %v133_v41  ;;  %s1483_s19 = smov (!%p166_p8, %s165_s19), 1  ;;  %vm248_vm10 = vcmask 1041408  }
  0x4e   :  { %vm180_vm15 = vmand %vm1396_vm13, %vm179_vm14  ;;  %v151_v42 = vstv %s150_s3  ;;  %1063 = vmatprep.subr.mxu1 %v1203_v3  ;;  %p184_p9 = scmp.gt.s32.totalorder %s183_s20, 1  ;;  %s935_s22 = sld [smem:[#allocation7 + $0x5]]  ;;  %vm250_vm11 = vcmask 1042432   ;;  %vm252_vm12 = vcmask 1043456   ;;  %vm254_vm13 = vcmask 1044480  }
  0x4f   :  { %v1414_v43 = vsel %vm180_vm15, 1.0, %v1203_v3  ;;  %1110 = vrcp.f32 %v151_v42  ;;  %s168_s23 = scvt.s32.f32 %s1483_s19  ;;  %s937_s24 = sld [smem:[#allocation6 + $0x6]]  ;;  %vm256_vm14 = vcmask 1045504   ;;  %vm258_vm15 = vcmask 1046528   ;;  %1064 = vmatpush3.msra.mxu1 %v342_v26 }
  0x50   :  { %s1485_s20 = smov (!%p184_p9, %s183_s20), 1  ;;  %s938_s25 = sld [smem:[#allocation7 + $0x6]] }
  0x51   :  { %v169_v44 = vstv %s168_s23  ;;  %s186_s26 = scvt.s32.f32 %s1485_s20  ;;  %s940_s27 = sld [smem:[#allocation6 + $0x7]] }
  0x52   :  { %1112 = vrcp.f32 %v169_v44  ;;  %s941_s28 = sld [smem:[#allocation7 + $0x7]]  ;;  %s1205_s3 = smov [#allocation8]  }
  0x53   :  { %v194_v45 = vstv %s934_s21  ;;  %v187_v46 = vstv %s186_s26  ;;  %s437_s20 = sshll.u32 %s1205_s3, 4  ;;  %s438_s20 = int_to_ptr.vmem [resolvable:$true] %s437_s20 }
  0x54   :  { %vm195_vm0 = vcmp.ge.s32.totalorder %v1264_v5, %v194_v45  ;;  %s201_s29 = ssub.s32 %s935_s22, %s934_s21  ;;  %v196_v47 = vstv %s935_s22  ;;  %1114 = vrcp.f32 %v187_v46  ;;  %s1158_s21 = scalar_lea.vmem %s438_s20, 128 }
  0x55   :  { %p202_p10 = scmp.gt.s32.totalorder %s201_s29, 1  ;;  %vm197_vm1 = vcmp.lt.s32.totalorder %v1264_v5, %v196_v47  ;;  %v212_v48 = vstv %s937_s24  ;;  %p1159_p13 = scmp.ne.s32.totalorder %s438_s20, %s1158_s21 }
  0x56   :  { %vm198_vm2 = vmand %vm195_vm0, %vm197_vm1  ;;  %vm1420_vm3 = vcmp.ge.s32.totalorder %v1264_v5, %v212_v48  ;;  %v214_v52 = vstv %s938_s25  ;;  %s219_s0 = ssub.s32 %s938_s25, %s937_s24  ;;  %vm268_vm0 = vcmask 523264   ;;  %p1163_p0 = scmp.lt.s32.totalorder %s438_s20, %s438_s20 }
  0x57   :  { %s1487_s29 = smov (!%p202_p10, %s201_s29), 1  ;;  %v1425_v51 = vsel %vm198_vm2, 1.0, %v1203_v3  ;;  %vm215_vm4 = vcmp.lt.s32.totalorder %v1264_v5, %v214_v52  ;;  %v230_v53 = vstv %s940_s27  ;;  %p220_p11 = scmp.gt.s32.totalorder %s219_s0, 1 }
  0x58   :  { %v1107_v50 = vpop.eup %1106  ;;  %s204_s1 = scvt.s32.f32 %s1487_s29  ;;  %vm216_vm5 = vmand %vm1420_vm3, %vm215_vm4  ;;  %vm231_vm6 = vcmp.ge.s32.totalorder %v1264_v5, %v230_v53  ;;  %v232_v54 = vstv %s941_s28  ;;  %s237_s30 = ssub.s32 %s941_s28, %s940_s27 }
  0x59   :  { %1068 = vpush %v1107_v50  ;;  %v939_v56 = vsel %vm216_vm5, 1.0, %v1203_v3  ;;  %vm233_vm7 = vcmp.lt.s32.totalorder %v1264_v5, %v232_v54  ;;  %s1489_s0 = smov (!%p220_p11, %s219_s0), 1  ;;  %p238_p12 = scmp.gt.s32.totalorder %s237_s30, 1 }
  0x5a   :  { %v1109_v55 = vpop.eup %1108  ;;  %v205_v58 = vstv %s204_s1  ;;  %vm234_vm8 = vmand %vm231_vm6, %vm233_vm7  ;;  %s222_s7 = scvt.s32.f32 %s1489_s0  ;;  %p1164_p1 = scmp.lt.s32.totalorder %s1158_s21, %s1158_s21 }
  0x5b   :  { %1070 = vpush %v1109_v55  ;;  %1116 = vrcp.f32 %v205_v58  ;;  %v942_v59 = vsel %vm234_vm8, 1.0, %v1203_v3  ;;  %s1491_s30 = smov (!%p238_p12, %s237_s30), 1 }
  0x5c   :  { %v1111_v57 = vpop.eup %1110  ;;  %v223_v61 = vstv %s222_s7  ;;  %s240_s8 = scvt.s32.f32 %s1491_s30  ;;  %p1165_p2 = por %p1164_p1, %p1163_p0 }
  0x5d   :  { %1072 = vpush %v1111_v57  ;;  %1118 = vrcp.f32 %v223_v61 }
  0x5e   :  { %v241_v63 = vstv %s240_s8  ;;  %p1166_p3 = pnand %p1165_p2, %p1159_p13 }
  0x5f   :  { %v1113_v60 = vpop.eup %1112  ;;  %1120 = vrcp.f32 %v241_v63 }
  0x60   :  { %1074 = vpush %v1113_v60 }
  0x61   :  { %v1115_v62 = vpop.eup %1114 }
  0x62   :  { %1076 = vpush %v1115_v62 }
  0x68   :  { %v1117_v0 = vpop.eup %1116 }
  0x69   :  { %1078 = vpush %v1117_v0 }
  0x6a   :  { %v1119_v1 = vpop.eup %1118 }
  0x6b   :  { %1080 = vpush %v1119_v1 }
  0x6c   :  { %v1121_v2 = vpop.eup %1120 }
  0x6d   :  { %1082 = vpush %v1121_v2 }
  0x8a   :  { %s1069_s9 = spop %1068 }
  0x8b   :  { %v118_v4 = vstv %s1069_s9 }
  0x8c   :  { %v119_v3 = vmul.f32 %v1324_v20, %v118_v4  ;;  %s1071_s10 = spop %1070 }
  0x8d   :  { %v136_v5 = vstv %s1071_s10 }
  0x8e   :  { %s1073_s11 = spop %1072  ;;  %v137_v6 = vmul.f32 %v1352_v27, %v136_v5 }
  0x8f   :  { %v154_v7 = vstv %s1073_s11 }
  0x90   :  { %v155_v8 = vmul.f32 %v1376_v34, %v154_v7  ;;  %v247_v9 = vsel %vm246_vm9, %v119_v3, %v137_v6 }
  0x91   :  { %s1075_s2 = spop %1074 }
  0x92   :  { %v249_v10 = vsel %vm248_vm10, %v247_v9, %v155_v8  ;;  %v172_v11 = vstv %s1075_s2 }
  0x93   :  { %v173_v12 = vmul.f32 %v1403_v40, %v172_v11  ;;  %s1077_s12 = spop %1076 }
  0x94   :  { %v190_v14 = vstv %s1077_s12 }
  0x95   :  { %v251_v13 = vsel %vm250_vm11, %v249_v10, %v173_v12  ;;  %v191_v15 = vmul.f32 %v1414_v43, %v190_v14 }
  0x97   :  { %v253_v16 = vsel %vm252_vm12, %v251_v13, %v191_v15 }
  0x9a   :  { %s1079_s13 = spop %1078 }
  0x9b   :  { %v208_v17 = vstv %s1079_s13 }
  0x9c   :  { %v209_v18 = vmul.f32 %v1425_v51, %v208_v17  ;;  %s1081_s14 = spop %1080 }
  0x9d   :  { %v226_v20 = vstv %s1081_s14 }
  0x9e   :  { %v255_v19 = vsel %vm254_vm13, %v253_v16, %v209_v18  ;;  %v227_v21 = vmul.f32 %v939_v56, %v226_v20  ;;  %s1083_s15 = spop %1082 }
  0x9f   :  { %v244_v22 = vstv %s1083_s15 }
  0xa0   :  { %v257_v23 = vsel %vm256_vm14, %v255_v19, %v227_v21  ;;  %v245_v24 = vmul.f32 %v942_v59, %v244_v22 }
  0xa2   :  { %v259_v25 = vsel %vm258_vm15, %v257_v23, %v245_v24 }
  0xa3   :  { %1047 = vmatmul.mubr.msk.f32.vlgmr.msra.gmra.mxu0 %vm268_vm0, %v259_v25 }
 0x163   :  { %v338_v27 = vpop.f32.mrf.mxu0 }
 0x164   :  { %1066 = vmatmul.mubr.msk.f32.vlgmr.msra.gmra.mxu1 %vm268_vm0, %v338_v27 }
 0x165   :  { %v1048_v28 = vpop.f32.mrf.mxu0 }
 0x224   :  { %v426_v30 = vpop.f32.mrf.mxu1 }
 0x225   :  { %v427_v31 = vadd.f32 %v944_v29, %v426_v30 }
 0x226   :  { %v1067_v32 = vpop.f32.mrf.mxu1 }
 0x227   :  { %430 = vst [vmem:[#allocation8] sm:$0xff] %v427_v31 }
 0x228   :  { %1169 = shalt.err (!%p1166_p3)
}
 0x229   :  { %440 = dma.vmem_to_hbm [thread:$0]  %s438_s20, 128, %s1453_s6, [#allocation9]  }
 0x22a   :  { %1190 = dma.done.wait [#allocation9], 128  }
 0x22b   :  { %1191 = vsyncadd [#allocation9], 4294967168 }
 0x22c   :  { %444 = vsyncpa [#allocation9], 1 }
 0x22d   :  { %445 = vsyncmov [#allocation3] }
 0x230   :  { %s446_s5 = vpop.sfrf %445 }
 0x231   :  { %p946_p4 = scmp.ne.s32.totalorder %s446_s5, 0 }
 0x233   :  { %450 = shalt.err (%p946_p4)  }
 0x234   :  { %452 = vsyncmov [#allocation3 + $0x1] }
 0x237   :  { %s453_s23 = vpop.sfrf %452 }
 0x238   :  { %p947_p5 = scmp.ne.s32.totalorder %s453_s23, 0 }
 0x23a   :  { %457 = shalt.err (%p947_p5)  }
 0x23b   :  { %459 = vsyncmov [#allocation3 + $0x2] }
 0x23e   :  { %s460_s24 = vpop.sfrf %459 }
 0x23f   :  { %p948_p6 = scmp.ne.s32.totalorder %s460_s24, 0 }
 0x241   :  { %464 = shalt.err (%p948_p6)  }
 0x242   :  { %466 = vsyncmov [#allocation3 + $0x3] }
 0x245   :  { %s467_s25 = vpop.sfrf %466 }
 0x246   :  { %p949_p7 = scmp.ne.s32.totalorder %s467_s25, 0 }
 0x248   :  { %471 = shalt.err (%p949_p7)  }
 0x249   :  { %473 = vsyncmov [#allocation3 + $0x4] }
 0x24c   :  { %s474_s6 = vpop.sfrf %473 }
 0x24d   :  { %p950_p8 = scmp.ne.s32.totalorder %s474_s6, 0 }
 0x24f   :  { %478 = shalt.err (%p950_p8)  }
 0x250   :  { %480 = vsyncmov [#allocation3 + $0x5] }
 0x253   :  { %s481_s26 = vpop.sfrf %480 }
 0x254   :  { %p951_p9 = scmp.ne.s32.totalorder %s481_s26, 0 }
 0x256   :  { %485 = shalt.err (%p951_p9)  }
 0x257   :  { %487 = vsyncmov [#allocation3 + $0x6] }
 0x25a   :  { %s488_s27 = vpop.sfrf %487 }
 0x25b   :  { %p952_p10 = scmp.ne.s32.totalorder %s488_s27, 0 }
 0x25d   :  { %492 = shalt.err (%p952_p10)  }
 0x25e   :  { %494 = vsyncmov [#allocation3 + $0x7] }
 0x261   :  { %s495_s28 = vpop.sfrf %494 }
 0x262   :  { %p953_p11 = scmp.ne.s32.totalorder %s495_s28, 0 }
 0x264   :  { %499 = shalt.err (%p953_p11)  }
 0x265   :  { %501 = vsyncmov [#allocation3 + $0x8] }
 0x268   :  { %s502_s29 = vpop.sfrf %501 }
 0x269   :  { %p954_p12 = scmp.ne.s32.totalorder %s502_s29, 0 }
 0x26b   :  { %506 = shalt.err (%p954_p12)  }
 0x26c   :  { %508 = vsyncmov [#allocation3 + $0x9] }
 0x26f   :  { %s509_s0 = vpop.sfrf %508 }
 0x270   :  { %p955_p13 = scmp.ne.s32.totalorder %s509_s0, 0 }
 0x272   :  { %513 = shalt.err (%p955_p13)  }
 0x273   :  { %515 = vsyncmov [#allocation3 + $0xa] }
 0x276   :  { %s516_s1 = vpop.sfrf %515 }
 0x277   :  { %p956_p0 = scmp.ne.s32.totalorder %s516_s1, 0 }
 0x279   :  { %520 = shalt.err (%p956_p0)  }
 0x27a   :  { %522 = vsyncmov [#allocation3 + $0xb] }
 0x27d   :  { %s523_s30 = vpop.sfrf %522 }
 0x27e   :  { %p957_p1 = scmp.ne.s32.totalorder %s523_s30, 0 }
 0x280   :  { %527 = shalt.err (%p957_p1)  }
 0x281   :  { %529 = vsyncmov [#allocation3 + $0xc] }
 0x284   :  { %s530_s7 = vpop.sfrf %529 }
 0x285   :  { %p958_p2 = scmp.ne.s32.totalorder %s530_s7, 0 }
 0x287   :  { %534 = shalt.err (%p958_p2)  }
 0x288   :  { %536 = vsyncmov [#allocation3 + $0xd] }
 0x28b   :  { %s537_s8 = vpop.sfrf %536 }
 0x28c   :  { %p959_p3 = scmp.ne.s32.totalorder %s537_s8, 0 }
 0x28e   :  { %541 = shalt.err (%p959_p3)  }
 0x28f   :  { %543 = vsyncmov [#allocation3 + $0xe] }
 0x292   :  { %s544_s9 = vpop.sfrf %543 }
 0x293   :  { %p960_p4 = scmp.ne.s32.totalorder %s544_s9, 0 }
 0x295   :  { %548 = shalt.err (%p960_p4)  }
 0x296   :  { %550 = vsyncmov [#allocation3 + $0xf] }
 0x299   :  { %s551_s10 = vpop.sfrf %550 }
 0x29a   :  { %p961_p5 = scmp.ne.s32.totalorder %s551_s10, 0 }
 0x29c   :  { %555 = shalt.err (%p961_p5)  }
 0x29d   :  { %557 = vsyncmov [#allocation3 + $0x10] }
 0x2a0   :  { %s558_s11 = vpop.sfrf %557 }
 0x2a1   :  { %p962_p6 = scmp.ne.s32.totalorder %s558_s11, 0 }
 0x2a3   :  { %562 = shalt.err (%p962_p6)  }
 0x2a4   :  { %564 = vsyncmov [#allocation3 + $0x11] }
 0x2a7   :  { %s565_s2 = vpop.sfrf %564 }
 0x2a8   :  { %p963_p7 = scmp.ne.s32.totalorder %s565_s2, 0 }
 0x2aa   :  { %569 = shalt.err (%p963_p7)  }
 0x2ab   :  { %571 = vsyncmov [#allocation3 + $0x12] }
 0x2ae   :  { %s572_s12 = vpop.sfrf %571 }
 0x2af   :  { %p964_p8 = scmp.ne.s32.totalorder %s572_s12, 0 }
 0x2b1   :  { %576 = shalt.err (%p964_p8)  }
 0x2b2   :  { %578 = vsyncmov [#allocation3 + $0x13] }
 0x2b5   :  { %s579_s13 = vpop.sfrf %578 }
 0x2b6   :  { %p965_p9 = scmp.ne.s32.totalorder %s579_s13, 0 }
 0x2b8   :  { %583 = shalt.err (%p965_p9)  }
 0x2b9   :  { %585 = vsyncmov [#allocation3 + $0x14] }
 0x2bc   :  { %s586_s14 = vpop.sfrf %585 }
 0x2bd   :  { %p966_p10 = scmp.ne.s32.totalorder %s586_s14, 0 }
 0x2bf   :  { %590 = shalt.err (%p966_p10)  }
 0x2c0   :  { %592 = vsyncmov [#allocation3 + $0x15] }
 0x2c3   :  { %s593_s15 = vpop.sfrf %592 }
 0x2c4   :  { %p967_p11 = scmp.ne.s32.totalorder %s593_s15, 0 }
 0x2c6   :  { %597 = shalt.err (%p967_p11)  }
 0x2c7   :  { %599 = vsyncmov [#allocation3 + $0x16] }
 0x2ca   :  { %s600_s16 = vpop.sfrf %599 }
 0x2cb   :  { %p968_p12 = scmp.ne.s32.totalorder %s600_s16, 0 }
 0x2cd   :  { %604 = shalt.err (%p968_p12)  }
 0x2ce   :  { %606 = vsyncmov [#allocation3 + $0x17] }
 0x2d1   :  { %s607_s17 = vpop.sfrf %606 }
 0x2d2   :  { %p969_p13 = scmp.ne.s32.totalorder %s607_s17, 0 }
 0x2d4   :  { %611 = shalt.err (%p969_p13)  }
 0x2d5   :  { %613 = vsyncmov [#allocation3 + $0x18] }
 0x2d8   :  { %s614_s18 = vpop.sfrf %613 }
 0x2d9   :  { %p970_p0 = scmp.ne.s32.totalorder %s614_s18, 0 }
 0x2db   :  { %618 = shalt.err (%p970_p0)  }
 0x2dc   :  { %620 = vsyncmov [#allocation3 + $0x19] }
 0x2df   :  { %s621_s19 = vpop.sfrf %620 }
 0x2e0   :  { %p971_p1 = scmp.ne.s32.totalorder %s621_s19, 0 }
 0x2e2   :  { %625 = shalt.err (%p971_p1)  }
 0x2e3   :  { %627 = vsyncmov [#allocation3 + $0x1a] }
 0x2e6   :  { %s628_s3 = vpop.sfrf %627 }
 0x2e7   :  { %p972_p2 = scmp.ne.s32.totalorder %s628_s3, 0 }
 0x2e9   :  { %632 = shalt.err (%p972_p2)  }
 0x2ea   :  { %634 = vsyncmov [#allocation3 + $0x1b] }
 0x2ed   :  { %s635_s20 = vpop.sfrf %634 }
 0x2ee   :  { %p973_p3 = scmp.ne.s32.totalorder %s635_s20, 0 }
 0x2f0   :  { %639 = shalt.err (%p973_p3)  }
 0x2f1   :  { %641 = vsyncmov [#allocation3 + $0x1c] }
 0x2f4   :  { %s642_s21 = vpop.sfrf %641 }
 0x2f5   :  { %p974_p4 = scmp.ne.s32.totalorder %s642_s21, 0 }
 0x2f7   :  { %646 = shalt.err (%p974_p4)  }
 0x2f8   :  { %648 = vsyncmov [#allocation3 + $0x1d] }
 0x2fb   :  { %s649_s4 = vpop.sfrf %648 }
 0x2fc   :  { %p975_p5 = scmp.ne.s32.totalorder %s649_s4, 0 }
 0x2fe   :  { %653 = shalt.err (%p975_p5)  }
 0x2ff   :  { %655 = vsyncmov [#allocation3 + $0x1e] }
 0x302   :  { %s656_s22 = vpop.sfrf %655 }
 0x303   :  { %p976_p6 = scmp.ne.s32.totalorder %s656_s22, 0 }
 0x305   :  { %660 = shalt.err (%p976_p6)  }
 0x306   :  { %662 = vsyncmov [#allocation3 + $0x1f] }
 0x309   :  { %s663_s5 = vpop.sfrf %662 }
 0x30a   :  { %p977_p7 = scmp.ne.s32.totalorder %s663_s5, 0 }
 0x30c   :  { %667 = shalt.err (%p977_p7)  }
 0x30d   :  { %669 = vsyncmov [#allocation3 + $0x20] }
 0x310   :  { %s670_s23 = vpop.sfrf %669 }
 0x311   :  { %p978_p8 = scmp.ne.s32.totalorder %s670_s23, 0 }
 0x313   :  { %674 = shalt.err (%p978_p8)  }
 0x314   :  { %676 = vsyncmov [#allocation3 + $0x21] }
 0x317   :  { %s677_s24 = vpop.sfrf %676 }
 0x318   :  { %p979_p9 = scmp.ne.s32.totalorder %s677_s24, 0 }
 0x31a   :  { %681 = shalt.err (%p979_p9)  }
 0x31b   :  { %683 = vsyncmov [#allocation3 + $0x22] }
 0x31e   :  { %s684_s25 = vpop.sfrf %683 }
 0x31f   :  { %p980_p10 = scmp.ne.s32.totalorder %s684_s25, 0 }
 0x321   :  { %688 = shalt.err (%p980_p10)  }
 0x322   :  { %690 = vsyncmov [#allocation3 + $0x23] }
 0x325   :  { %s691_s6 = vpop.sfrf %690 }
 0x326   :  { %p981_p11 = scmp.ne.s32.totalorder %s691_s6, 0 }
 0x328   :  { %695 = shalt.err (%p981_p11)  }
 0x329   :  { %697 = vsyncmov [#allocation3 + $0x24] }
 0x32c   :  { %s698_s26 = vpop.sfrf %697 }
 0x32d   :  { %p982_p12 = scmp.ne.s32.totalorder %s698_s26, 0 }
 0x32f   :  { %702 = shalt.err (%p982_p12)  }
 0x330   :  { %704 = vsyncmov [#allocation3 + $0x25] }
 0x333   :  { %s705_s27 = vpop.sfrf %704 }
 0x334   :  { %p983_p13 = scmp.ne.s32.totalorder %s705_s27, 0 }
 0x336   :  { %709 = shalt.err (%p983_p13)  }
 0x337   :  { %711 = vsyncmov [#allocation3 + $0x26] }
 0x33a   :  { %s712_s28 = vpop.sfrf %711 }
 0x33b   :  { %p984_p0 = scmp.ne.s32.totalorder %s712_s28, 0 }
 0x33d   :  { %716 = shalt.err (%p984_p0)  }
 0x33e   :  { %718 = vsyncmov [#allocation3 + $0x27] }
 0x341   :  { %s719_s29 = vpop.sfrf %718 }
 0x342   :  { %p985_p1 = scmp.ne.s32.totalorder %s719_s29, 0 }
 0x344   :  { %723 = shalt.err (%p985_p1)  }
 0x345   :  { %725 = vsyncmov [#allocation3 + $0x28] }
 0x348   :  { %s726_s0 = vpop.sfrf %725 }
 0x349   :  { %p986_p2 = scmp.ne.s32.totalorder %s726_s0, 0 }
 0x34b   :  { %730 = shalt.err (%p986_p2)  }
 0x34c   :  { %732 = vsyncmov [#allocation3 + $0x29] }
 0x34f   :  { %s733_s1 = vpop.sfrf %732 }
 0x350   :  { %p987_p3 = scmp.ne.s32.totalorder %s733_s1, 0 }
 0x352   :  { %737 = shalt.err (%p987_p3)  }
 0x353   :  { %739 = vsyncmov [#allocation3 + $0x2a] }
 0x356   :  { %s740_s30 = vpop.sfrf %739 }
 0x357   :  { %p988_p4 = scmp.ne.s32.totalorder %s740_s30, 0 }
 0x359   :  { %744 = shalt.err (%p988_p4)  }
 0x35a   :  { %746 = vsyncmov [#allocation3 + $0x2b] }
 0x35d   :  { %s747_s7 = vpop.sfrf %746 }
 0x35e   :  { %p989_p5 = scmp.ne.s32.totalorder %s747_s7, 0 }
 0x360   :  { %751 = shalt.err (%p989_p5)  }
 0x361   :  { %753 = vsyncmov [#allocation3 + $0x2c] }
 0x364   :  { %s754_s8 = vpop.sfrf %753 }
 0x365   :  { %p990_p6 = scmp.ne.s32.totalorder %s754_s8, 0 }
 0x367   :  { %758 = shalt.err (%p990_p6)  }
 0x368   :  { %760 = vsyncmov [#allocation3 + $0x2d] }
 0x36b   :  { %s761_s9 = vpop.sfrf %760 }
 0x36c   :  { %p991_p7 = scmp.ne.s32.totalorder %s761_s9, 0 }
 0x36e   :  { %765 = shalt.err (%p991_p7)  }
 0x36f   :  { %767 = vsyncmov [#allocation3 + $0x2e] }
 0x372   :  { %s768_s10 = vpop.sfrf %767 }
 0x373   :  { %p992_p8 = scmp.ne.s32.totalorder %s768_s10, 0 }
 0x375   :  { %772 = shalt.err (%p992_p8)  }
 0x376   :  { %774 = vsyncmov [#allocation3 + $0x2f] }
 0x379   :  { %s775_s11 = vpop.sfrf %774 }
 0x37a   :  { %p993_p9 = scmp.ne.s32.totalorder %s775_s11, 0 }
 0x37c   :  { %779 = shalt.err (%p993_p9)  }
 0x37d   :  { %781 = vsyncmov [#allocation3 + $0x30] }
 0x380   :  { %s782_s2 = vpop.sfrf %781 }
 0x381   :  { %p994_p10 = scmp.ne.s32.totalorder %s782_s2, 0 }
 0x383   :  { %786 = shalt.err (%p994_p10)  }
 0x384   :  { %788 = vsyncmov [#allocation3 + $0x31] }
 0x387   :  { %s789_s12 = vpop.sfrf %788 }
 0x388   :  { %p995_p11 = scmp.ne.s32.totalorder %s789_s12, 0 }
 0x38a   :  { %793 = shalt.err (%p995_p11)  }
 0x38b   :  { %795 = vsyncmov [#allocation3 + $0x32] }
 0x38e   :  { %s796_s13 = vpop.sfrf %795 }
 0x38f   :  { %p996_p12 = scmp.ne.s32.totalorder %s796_s13, 0 }
 0x391   :  { %800 = shalt.err (%p996_p12)  }
 0x392   :  { %802 = vsyncmov [#allocation3 + $0x33] }
 0x395   :  { %s803_s14 = vpop.sfrf %802 }
 0x396   :  { %p997_p13 = scmp.ne.s32.totalorder %s803_s14, 0 }
 0x398   :  { %807 = shalt.err (%p997_p13)  }
 0x399   :  { %809 = vsyncmov [#allocation3 + $0x34] }
 0x39c   :  { %s810_s15 = vpop.sfrf %809 }
 0x39d   :  { %p998_p0 = scmp.ne.s32.totalorder %s810_s15, 0 }
 0x39f   :  { %814 = shalt.err (%p998_p0)  }
 0x3a0   :  { %816 = vsyncmov [#allocation3 + $0x35] }
 0x3a3   :  { %s817_s16 = vpop.sfrf %816 }
 0x3a4   :  { %p999_p1 = scmp.ne.s32.totalorder %s817_s16, 0 }
 0x3a6   :  { %821 = shalt.err (%p999_p1)  }
 0x3a7   :  { %823 = vsyncmov [#allocation3 + $0x36] }
 0x3aa   :  { %s824_s17 = vpop.sfrf %823 }
 0x3ab   :  { %p1000_p2 = scmp.ne.s32.totalorder %s824_s17, 0 }
 0x3ad   :  { %828 = shalt.err (%p1000_p2)  }
 0x3ae   :  { %830 = vsyncmov [#allocation3 + $0x37] }
 0x3b1   :  { %s831_s18 = vpop.sfrf %830 }
 0x3b2   :  { %p1001_p3 = scmp.ne.s32.totalorder %s831_s18, 0 }
 0x3b4   :  { %835 = shalt.err (%p1001_p3)  }
 0x3b5   :  { %837 = vsyncmov [#allocation3 + $0x38] }
 0x3b8   :  { %s838_s19 = vpop.sfrf %837 }
 0x3b9   :  { %p1002_p4 = scmp.ne.s32.totalorder %s838_s19, 0 }
 0x3bb   :  { %842 = shalt.err (%p1002_p4)  }
 0x3bc   :  { %844 = vsyncmov [#allocation3 + $0x39] }
 0x3bf   :  { %s845_s3 = vpop.sfrf %844 }
 0x3c0   :  { %p1003_p5 = scmp.ne.s32.totalorder %s845_s3, 0 }
 0x3c2   :  { %849 = shalt.err (%p1003_p5)  }
 0x3c3   :  { %851 = vsyncmov [#allocation3 + $0x3a] }
 0x3c6   :  { %s852_s20 = vpop.sfrf %851 }
 0x3c7   :  { %p1004_p6 = scmp.ne.s32.totalorder %s852_s20, 0 }
 0x3c9   :  { %856 = shalt.err (%p1004_p6)  }
 0x3ca   :  { %858 = vsyncmov [#allocation3 + $0x3b] }
 0x3cd   :  { %s859_s21 = vpop.sfrf %858 }
 0x3ce   :  { %p1005_p7 = scmp.ne.s32.totalorder %s859_s21, 0 }
 0x3d0   :  { %863 = shalt.err (%p1005_p7)  }
 0x3d1   :  { %865 = vsyncmov [#allocation3 + $0x3c] }
 0x3d4   :  { %s866_s4 = vpop.sfrf %865 }
 0x3d5   :  { %p1006_p8 = scmp.ne.s32.totalorder %s866_s4, 0 }
 0x3d7   :  { %870 = shalt.err (%p1006_p8)  }
 0x3d8   :  { %872 = vsyncmov [#allocation3 + $0x3d] }
 0x3db   :  { %s873_s22 = vpop.sfrf %872 }
 0x3dc   :  { %p1007_p9 = scmp.ne.s32.totalorder %s873_s22, 0 }
 0x3de   :  { %877 = shalt.err (%p1007_p9)  }
 0x3df   :  { %879 = vsyncmov [#allocation3 + $0x3e] }
 0x3e2   :  { %s880_s5 = vpop.sfrf %879 }
 0x3e3   :  { %p1008_p10 = scmp.ne.s32.totalorder %s880_s5, 0 }
 0x3e5   :  { %884 = shalt.err (%p1008_p10)  }
 0x3e6   :  { %886 = vsyncmov [#allocation3 + $0x3f] }
 0x3e9   :  { %s887_s23 = vpop.sfrf %886 }
 0x3ea   :  { %p1009_p11 = scmp.ne.s32.totalorder %s887_s23, 0 }
 0x3ec   :  { %891 = shalt.err (%p1009_p11)  }

</bundles_post_ra>
